<compile_context>
chip_gen: v7x
topology: tpu7x:2x2x1
jax: 0.10.0
libtpu: 0.0.40
codegen_flags: <defaults>
</compile_context>

<pallas_src>
import jax
import jax.numpy as jnp
from jax.experimental import pallas as pl
from jax.experimental.pallas import tpu as pltpu

LANE = 128          # padded hidden width (100 -> 128) for lane-dense matmuls
IN_DIM = 36
HIDDEN = 100
OUT_DIM = 100


def _round_up(n, m):
    return ((n + m - 1) // m) * m


def _p2s_kernel(x_ref, w1_ref, w_ref, b_ref, out_ref):
    # x_ref:   [tb, in_dim]    f32  (raw, unpadded; cast + K=in_dim dot)
    # w1_ref:  [in_dim, 128]   bf16 (fc1 weight, outputs lane-padded to 128)
    # w_ref:   [2, 128, 128]   bf16 (fc2 / out weights, stored [in, out])
    # b_ref:   [3, 1, 128]     f32  (fc1 / fc2 / out biases, lane-padded)
    # out_ref: [tb, out_dim]   bf16 (lane dim == real out_dim, no padding)
    out_dim = out_ref.shape[-1]

    x = x_ref[...].astype(jnp.bfloat16)                                # [tb, 36]

    # y = relu(fc1(x))
    y = jnp.dot(x, w1_ref[...], preferred_element_type=jnp.float32) + b_ref[0]
    y = jnp.maximum(y, 0.0).astype(jnp.bfloat16)
    # y = relu(fc2(y))
    y = jnp.dot(y, w_ref[0], preferred_element_type=jnp.float32) + b_ref[1]
    y = jnp.maximum(y, 0.0).astype(jnp.bfloat16)
    # y = relu(fc2(y))   (fc2 applied twice in the reference forward)
    y = jnp.dot(y, w_ref[0], preferred_element_type=jnp.float32) + b_ref[1]
    y = jnp.maximum(y, 0.0).astype(jnp.bfloat16)
    # out = self.out(y)
    o = jnp.dot(y, w_ref[1], preferred_element_type=jnp.float32) + b_ref[2]

    out_ref[...] = o[:, :out_dim].astype(out_ref.dtype)


def pack_params(params):
    """Pack weights/biases into three resident buffers (fc1 | {fc2,out} | biases)."""
    def pad_w(w):
        fi, fo = w.shape
        return jnp.zeros((LANE, LANE), jnp.float32).at[:fi, :fo].set(w)

    def pad_b(b):
        fo = b.shape[-1]
        return jnp.zeros((1, LANE), jnp.float32).at[:, :fo].set(b.reshape(1, -1))

    in_dim, _ = params["w1"].shape
    w1_packed = jnp.zeros((in_dim, LANE), jnp.float32).at[:, :params["w1"].shape[1]] \
        .set(params["w1"]).astype(jnp.bfloat16)                       # [36, 128] bf16
    w2o_packed = jnp.stack(
        [pad_w(params["w2"]), pad_w(params["wo"])]
    ).astype(jnp.bfloat16)                                            # [2, 128, 128] bf16
    b_packed = jnp.stack(
        [pad_b(params["b1"]), pad_b(params["b2"]), pad_b(params["bo"])]
    )                                                                 # [3, 1, 128] f32
    return w1_packed, w2o_packed, b_packed


def _choose_tb(B, tile_b):
    """Batch tile: big tiles for large B, >=2 grid steps when possible (v7x)."""
    if B >= 2 * tile_b:
        return tile_b
    if B >= 32:
        # At least 2 grid steps so both v7x TensorCores get work; 16-row multiple
        # keeps bf16 sublane packing clean.
        return min(tile_b, _round_up((B + 1) // 2, 16))
    if B > 16:
        return 16
    return B                     # single full-extent block (always a legal block)


def p2s_forward(x, w1_packed, w2o_packed, b_packed, out_dim=OUT_DIM,
                tile_b=2048, out_dtype=jnp.bfloat16):
    """x: [B, input_dim] f32 (unpadded). Returns [B, out_dim] in `out_dtype`."""
    B, in_dim = x.shape
    tb = _choose_tb(B, tile_b)
    grid = (pl.cdiv(B, tb),)     # partial last block is masked by Pallas

    return pl.pallas_call(
        _p2s_kernel,
        out_shape=jax.ShapeDtypeStruct((B, out_dim), out_dtype),
        grid=grid,
        in_specs=[
            pl.BlockSpec((tb, in_dim), lambda i: (i, 0)),            # x tile (raw f32)
            pl.BlockSpec((in_dim, LANE), lambda i: (0, 0)),          # fc1 W  (resident)
            pl.BlockSpec((2, LANE, LANE), lambda i: (0, 0, 0)),      # fc2/out W (resident)
            pl.BlockSpec((3, 1, LANE), lambda i: (0, 0, 0)),         # biases (resident)
        ],
        out_specs=pl.BlockSpec((tb, out_dim), lambda i: (i, 0)),
        compiler_params=pltpu.CompilerParams(
            dimension_semantics=("parallel",),
            vmem_limit_bytes=32 * 1024 * 1024,
        ),
    )(x, w1_packed, w2o_packed, b_packed)


def init_params(key, input_dim=IN_DIM, hidden=HIDDEN, output_dim=OUT_DIM):
    """Deterministic synthetic parameters (PyTorch-Linear-like uniform init)."""
    def linear(k, fan_in, fan_out):
        kw, kb = jax.random.split(k)
        bound = 1.0 / jnp.sqrt(fan_in)
        # Stored as [in, out] (transpose of PyTorch's [out, in]).
        w = jax.random.uniform(kw, (fan_in, fan_out), jnp.float32, -bound, bound)
        b = jax.random.uniform(kb, (1, fan_out), jnp.float32, -bound, bound)
        return w, b

    k1, k2, k3, k4 = jax.random.split(key, 4)
    w1, b1 = linear(k1, input_dim, hidden)
    w2, b2 = linear(k2, hidden, hidden)
    _w3, _b3 = linear(k3, hidden, hidden)   # fc3: defined but unused in forward
    wo, bo = linear(k4, hidden, output_dim)
    return {"w1": w1, "b1": b1, "w2": w2, "b2": b2, "wo": wo, "bo": bo}


def _reference_bf16(x, p):
    """Reference with the same bf16-in / f32-accumulate quantization as the kernel."""
    def lin(v, w, b):
        return jnp.dot(v.astype(jnp.bfloat16), w.astype(jnp.bfloat16),
                       preferred_element_type=jnp.float32) + b
    y = jnp.maximum(lin(x, p["w1"], p["b1"]), 0.0)
    y = jnp.maximum(lin(y, p["w2"], p["b2"]), 0.0)
    y = jnp.maximum(lin(y, p["w2"], p["b2"]), 0.0)
    return lin(y, p["wo"], p["bo"])


def _reference_f32(x, p):
    y = jnp.maximum(x @ p["w1"] + p["b1"], 0.0)
    y = jnp.maximum(y @ p["w2"] + p["b2"], 0.0)
    y = jnp.maximum(y @ p["w2"] + p["b2"], 0.0)
    return y @ p["wo"] + p["bo"]


def _check(x, params, packed, label):
    out = p2s_forward(x, *packed)
    out = jax.block_until_ready(out)
    assert out.shape == (x.shape[0], OUT_DIM), (label, out.shape)
    out_f32 = out.astype(jnp.float32)
    # Tight check vs. bf16-quantized reference (bf16 output adds one rounding).
    ref_bf16 = _reference_bf16(x, params)
    assert jnp.allclose(out_f32, ref_bf16, atol=3e-2, rtol=3e-2), \
        (label, float(jnp.max(jnp.abs(out_f32 - ref_bf16))))
    # Loose sanity check vs. full-f32 reference.
    ref_f32 = _reference_f32(x, params)
    assert jnp.allclose(out_f32, ref_f32, atol=1.5e-1, rtol=1e-1), \
        (label, float(jnp.max(jnp.abs(out_f32 - ref_f32))))
    return out


if __name__ == "__main__":
    key = jax.random.PRNGKey(0)
    kp, kx1, kx2 = jax.random.split(key, 3)

    params = init_params(kp)
    packed = pack_params(params)

    # Small batch (single full-extent block).
    x_small = jax.random.normal(kx1, (8, IN_DIM), dtype=jnp.float32)
    _check(x_small, params, packed, "small")

    # Larger batch: exercises the multi-step grid and a masked partial last block.
    x_big = jax.random.normal(kx2, (300, IN_DIM), dtype=jnp.float32)
    _check(x_big, params, packed, "big")

    print("KERNEL_OK")
</pallas_src>

<mosaic_0001>
module attributes {stable_mosaic.version = 11 : i64} {
  func.func @_p2s_kernel(%arg0: i32, %arg1: memref<8x36xf32, #tpu.memory_space<vmem>>, %arg2: memref<36x128xbf16, #tpu.memory_space<vmem>>, %arg3: memref<2x128x128xbf16, #tpu.memory_space<vmem>>, %arg4: memref<3x1x128xf32, #tpu.memory_space<vmem>>, %arg5: memref<8x100xbf16, #tpu.memory_space<vmem>>) attributes {dimension_semantics = [#tpu.dimension_semantics<parallel>], iteration_bounds = array<i64: 1>, scalar_prefetch = 0 : i64, scratch_operands = 0 : i64, tpu.core_type = #tpu.core_type<tc>, window_params = [{transform_indices = @transform_0, window_bounds = array<i64: 8, 36>}, {pipeline_mode = #tpu.pipeline_mode<synchronous>, transform_indices = @transform_1, window_bounds = array<i64: 36, 128>}, {pipeline_mode = #tpu.pipeline_mode<synchronous>, transform_indices = @transform_2, window_bounds = array<i64: 2, 128, 128>}, {pipeline_mode = #tpu.pipeline_mode<synchronous>, transform_indices = @transform_3, window_bounds = array<i64: 3, 1, 128>}, {transform_indices = @transform_4, window_bounds = array<i64: 8, 100>}]} {
    %c0 = arith.constant 0 : index
    %c0_0 = arith.constant 0 : index
    %0 = vector.load %arg1[%c0, %c0_0] : memref<8x36xf32, #tpu.memory_space<vmem>>, vector<8x36xf32>
    %1 = arith.truncf %0 : vector<8x36xf32> to vector<8x36xbf16>
    %c0_1 = arith.constant 0 : index
    %c0_2 = arith.constant 0 : index
    %2 = vector.load %arg2[%c0_1, %c0_2] : memref<36x128xbf16, #tpu.memory_space<vmem>>, vector<36x128xbf16>
    %cst = arith.constant dense<0.000000e+00> : vector<8x128xf32>
    %3 = tpu.matmul %1, %2, %cst {dimension_numbers = #tpu.dot_dimension_numbers<[1], [0], [0], [1], [0, 0, 1, 1], [], []>} : vector<8x36xbf16>, vector<36x128xbf16>, vector<8x128xf32> -> vector<8x128xf32>
    %c0_3 = arith.constant 0 : index
    %c0_4 = arith.constant 0 : index
    %c0_5 = arith.constant 0 : index
    %4 = vector.load %arg4[%c0_3, %c0_4, %c0_5] : memref<3x1x128xf32, #tpu.memory_space<vmem>>, vector<1x1x128xf32>
    %5 = vector.shape_cast %4 : vector<1x1x128xf32> to vector<1x128xf32>
    %6 = vector.broadcast %5 : vector<1x128xf32> to vector<8x128xf32>
    %7 = arith.addf %3, %6 : vector<8x128xf32>
    %cst_6 = arith.constant 0.000000e+00 : f32
    %8 = vector.broadcast %cst_6 : f32 to vector<8x128xf32>
    %9 = arith.maximumf %7, %8 : vector<8x128xf32>
    %10 = arith.truncf %9 : vector<8x128xf32> to vector<8x128xbf16>
    %c0_7 = arith.constant 0 : index
    %c0_8 = arith.constant 0 : index
    %c0_9 = arith.constant 0 : index
    %11 = vector.load %arg3[%c0_7, %c0_8, %c0_9] : memref<2x128x128xbf16, #tpu.memory_space<vmem>>, vector<1x128x128xbf16>
    %12 = vector.shape_cast %11 : vector<1x128x128xbf16> to vector<128x128xbf16>
    %cst_10 = arith.constant dense<0.000000e+00> : vector<8x128xf32>
    %13 = tpu.matmul %10, %12, %cst_10 {dimension_numbers = #tpu.dot_dimension_numbers<[1], [0], [0], [1], [0, 0, 1, 1], [], []>} : vector<8x128xbf16>, vector<128x128xbf16>, vector<8x128xf32> -> vector<8x128xf32>
    %c1 = arith.constant 1 : index
    %c0_11 = arith.constant 0 : index
    %c0_12 = arith.constant 0 : index
    %14 = vector.load %arg4[%c1, %c0_11, %c0_12] : memref<3x1x128xf32, #tpu.memory_space<vmem>>, vector<1x1x128xf32>
    %15 = vector.shape_cast %14 : vector<1x1x128xf32> to vector<1x128xf32>
    %16 = vector.broadcast %15 : vector<1x128xf32> to vector<8x128xf32>
    %17 = arith.addf %13, %16 : vector<8x128xf32>
    %cst_13 = arith.constant 0.000000e+00 : f32
    %18 = vector.broadcast %cst_13 : f32 to vector<8x128xf32>
    %19 = arith.maximumf %17, %18 : vector<8x128xf32>
    %20 = arith.truncf %19 : vector<8x128xf32> to vector<8x128xbf16>
    %c0_14 = arith.constant 0 : index
    %c0_15 = arith.constant 0 : index
    %c0_16 = arith.constant 0 : index
    %21 = vector.load %arg3[%c0_14, %c0_15, %c0_16] : memref<2x128x128xbf16, #tpu.memory_space<vmem>>, vector<1x128x128xbf16>
    %22 = vector.shape_cast %21 : vector<1x128x128xbf16> to vector<128x128xbf16>
    %cst_17 = arith.constant dense<0.000000e+00> : vector<8x128xf32>
    %23 = tpu.matmul %20, %22, %cst_17 {dimension_numbers = #tpu.dot_dimension_numbers<[1], [0], [0], [1], [0, 0, 1, 1], [], []>} : vector<8x128xbf16>, vector<128x128xbf16>, vector<8x128xf32> -> vector<8x128xf32>
    %c1_18 = arith.constant 1 : index
    %c0_19 = arith.constant 0 : index
    %c0_20 = arith.constant 0 : index
    %24 = vector.load %arg4[%c1_18, %c0_19, %c0_20] : memref<3x1x128xf32, #tpu.memory_space<vmem>>, vector<1x1x128xf32>
    %25 = vector.shape_cast %24 : vector<1x1x128xf32> to vector<1x128xf32>
    %26 = vector.broadcast %25 : vector<1x128xf32> to vector<8x128xf32>
    %27 = arith.addf %23, %26 : vector<8x128xf32>
    %cst_21 = arith.constant 0.000000e+00 : f32
    %28 = vector.broadcast %cst_21 : f32 to vector<8x128xf32>
    %29 = arith.maximumf %27, %28 : vector<8x128xf32>
    %30 = arith.truncf %29 : vector<8x128xf32> to vector<8x128xbf16>
    %c1_22 = arith.constant 1 : index
    %c0_23 = arith.constant 0 : index
    %c0_24 = arith.constant 0 : index
    %31 = vector.load %arg3[%c1_22, %c0_23, %c0_24] : memref<2x128x128xbf16, #tpu.memory_space<vmem>>, vector<1x128x128xbf16>
    %32 = vector.shape_cast %31 : vector<1x128x128xbf16> to vector<128x128xbf16>
    %cst_25 = arith.constant dense<0.000000e+00> : vector<8x128xf32>
    %33 = tpu.matmul %30, %32, %cst_25 {dimension_numbers = #tpu.dot_dimension_numbers<[1], [0], [0], [1], [0, 0, 1, 1], [], []>} : vector<8x128xbf16>, vector<128x128xbf16>, vector<8x128xf32> -> vector<8x128xf32>
    %c2 = arith.constant 2 : index
    %c0_26 = arith.constant 0 : index
    %c0_27 = arith.constant 0 : index
    %34 = vector.load %arg4[%c2, %c0_26, %c0_27] : memref<3x1x128xf32, #tpu.memory_space<vmem>>, vector<1x1x128xf32>
    %35 = vector.shape_cast %34 : vector<1x1x128xf32> to vector<1x128xf32>
    %36 = vector.broadcast %35 : vector<1x128xf32> to vector<8x128xf32>
    %37 = arith.addf %33, %36 : vector<8x128xf32>
    %38 = vector.extract_strided_slice %37 {offsets = [0, 0], sizes = [8, 100], strides = [1, 1]} : vector<8x128xf32> to vector<8x100xf32>
    %39 = arith.truncf %38 : vector<8x100xf32> to vector<8x100xbf16>
    %c0_28 = arith.constant 0 : index
    %c0_29 = arith.constant 0 : index
    %40 = vector.load %arg5[%c0_28, %c0_29] : memref<8x100xbf16, #tpu.memory_space<vmem>>, vector<8x100xbf16>
    tpu.vector_store %arg5[%c0_28, %c0_29], %39 {strides = array<i32>} : memref<8x100xbf16, #tpu.memory_space<vmem>>, vector<8x100xbf16>,
    return
  }
  func.func @transform_0(%arg0: i32) -> (i32, i32) {
    %c0_i32 = arith.constant 0 : i32
    %c0_i32_0 = arith.constant 0 : i32
    return %arg0, %c0_i32 : i32, i32
  }
  func.func @transform_1(%arg0: i32) -> (i32, i32) {
    %c0_i32 = arith.constant 0 : i32
    %c0_i32_0 = arith.constant 0 : i32
    %c0_i32_1 = arith.constant 0 : i32
    return %c0_i32, %c0_i32_0 : i32, i32
  }
  func.func @transform_2(%arg0: i32) -> (i32, i32, i32) {
    %c0_i32 = arith.constant 0 : i32
    %c0_i32_0 = arith.constant 0 : i32
    %c0_i32_1 = arith.constant 0 : i32
    %c0_i32_2 = arith.constant 0 : i32
    return %c0_i32, %c0_i32_0, %c0_i32_1 : i32, i32, i32
  }
  func.func @transform_3(%arg0: i32) -> (i32, i32, i32) {
    %c0_i32 = arith.constant 0 : i32
    %c0_i32_0 = arith.constant 0 : i32
    %c0_i32_1 = arith.constant 0 : i32
    %c0_i32_2 = arith.constant 0 : i32
    return %c0_i32, %c0_i32_0, %c0_i32_1 : i32, i32, i32
  }
  func.func @transform_4(%arg0: i32) -> (i32, i32) {
    %c0_i32 = arith.constant 0 : i32
    %c0_i32_0 = arith.constant 0 : i32
    return %arg0, %c0_i32 : i32, i32
  }
}

</mosaic_0001>

<bundles_post_ra>
// kernel: tpu_custom_call.1
= control target key start
LH: loop header
LB: loop body
LE: loop exit
PB: predicated region body
PF: predicated region fallthrough
CT: control target
= control target key end

     0   :  { %9 = vsyncpa [#allocation3], 0  ;;  %s803_s0 = inlined_call_operand.hbm [shape: f32[8,36], index: 0, kind: input, shape index: {}]   ;;  %s804_s1 = inlined_call_operand.hbm [shape: bf16[36,128], index: 1, kind: input, shape index: {}]   ;;  %s805_s2 = inlined_call_operand.hbm [shape: bf16[2,128,128], index: 2, kind: input, shape index: {}]   ;;  %s806_s3 = inlined_call_operand.vmem [shape: f32[3,1,128], index: 3, kind: input, shape index: {}]   ;;  %s807_s4 = inlined_call_operand.hbm [shape: bf16[8,100], index: 4, kind: output, shape index: {}]  }
   0x1   :  { %10 = vsyncpa [#allocation6], 0 }
   0x2   :  { %11 = vsyncpa [#allocation4], 0  ;;  %s672_s15 = smov [#allocation5]   ;;  %s578_s19 = scalar_lea.hbm %s804_s1, 320 }
   0x3   :  { %s27_s16 = sshll.u32 %s672_s15, 4  ;;  %p579_p0 = scmp.ne.s32.totalorder %s804_s1, %s578_s19  ;;  %s28_s16 = int_to_ptr.vmem [resolvable:$true] %s27_s16 }
   0x4   :  { %p582_p1 = scmp.lt.u32.totalorder %s578_s19, %s804_s1 }
   0x6   :  { %p584_p2 = pnand %p582_p1, %p579_p0 }
   0x8   :  { %587 = shalt.err (!%p584_p2)
}
   0x9   :  { %s588_s24 = scalar_lea.vmem %s28_s16, 320  ;;  %p593_p4 = scmp.lt.s32.totalorder %s28_s16, %s28_s16 }
   0xa   :  { %p589_p3 = scmp.ne.s32.totalorder %s28_s16, %s588_s24  ;;  %p594_p5 = scmp.lt.s32.totalorder %s588_s24, %s588_s24 }
   0xc   :  { %p595_p6 = por %p594_p5, %p593_p4 }
   0xe   :  { %p596_p7 = pnand %p595_p6, %p589_p3 }
  0x10   :  { %599 = shalt.err (!%p596_p7)
}
  0x11   :  { %s673_s25 = smov 64   ;;  %s674_s26 = smov 4  }
  0x12   :  { %33 = dma.hbm_to_vmem [thread:$0]  %s804_s1, 320, %s28_s16, [#allocation6], %s673_s25, %s673_s25, %s674_s26  }
  0x13   :  { %s675_s29 = smov [#allocation2]   ;;  %s676_s5 = smov [#allocation7]  }
  0x14   :  { %s18_s30 = sshll.u32 %s675_s29, 4  ;;  %s39_s6 = sshll.u32 %s676_s5, 4  ;;  %s19_s30 = int_to_ptr.vmem [resolvable:$true] %s18_s30  ;;  %s40_s6 = int_to_ptr.vmem [resolvable:$true] %s39_s6 }
  0x15   :  { %s600_s9 = scalar_lea.hbm %s803_s0, 128 }
  0x16   :  { %p601_p8 = scmp.ne.s32.totalorder %s803_s0, %s600_s9  ;;  %p604_p9 = scmp.lt.u32.totalorder %s600_s9, %s803_s0 }
  0x18   :  { %p606_p10 = pnand %p604_p9, %p601_p8 }
  0x1a   :  { %609 = shalt.err (!%p606_p10)
}
  0x1b   :  { %s610_s1 = scalar_lea.vmem %s19_s30, 128  ;;  %p615_p12 = scmp.lt.s32.totalorder %s19_s30, %s19_s30 }
  0x1c   :  { %p611_p11 = scmp.ne.s32.totalorder %s19_s30, %s610_s1  ;;  %p616_p13 = scmp.lt.s32.totalorder %s610_s1, %s610_s1 }
  0x1e   :  { %p617_p0 = por %p616_p13, %p615_p12 }
  0x20   :  { %p618_p1 = pnand %p617_p0, %p611_p11 }
  0x22   :  { %621 = shalt.err (!%p618_p1)
}
  0x23   :  { %21 = dma.hbm_to_vmem [thread:$0]  %s803_s0, 128, %s19_s30, [#allocation3]  }
  0x24   :  { %s622_s18 = scalar_lea.hbm %s805_s2, 2048 }
  0x25   :  { %p623_p2 = scmp.ne.s32.totalorder %s805_s2, %s622_s18  ;;  %p626_p3 = scmp.lt.u32.totalorder %s622_s18, %s805_s2 }
  0x27   :  { %p628_p4 = pnand %p626_p3, %p623_p2 }
  0x29   :  { %631 = shalt.err (!%p628_p4)
}
  0x2a   :  { %s632_s23 = scalar_lea.vmem %s40_s6, 2048  ;;  %p637_p6 = scmp.lt.s32.totalorder %s40_s6, %s40_s6 }
  0x2b   :  { %p633_p5 = scmp.ne.s32.totalorder %s40_s6, %s632_s23  ;;  %p638_p7 = scmp.lt.s32.totalorder %s632_s23, %s632_s23 }
  0x2d   :  { %p639_p8 = por %p638_p7, %p637_p6 }
  0x2f   :  { %p640_p9 = pnand %p639_p8, %p633_p5 }
  0x31   :  { %643 = shalt.err (!%p640_p9)
}
  0x32   :  { %45 = dma.hbm_to_vmem [thread:$0]  %s805_s2, 2048, %s40_s6, [#allocation6], %s673_s25, %s673_s25, %s674_s26  }
  0x33   :  { %666 = dma.done.wait [#allocation3], 128  }
  0x34   :  { %667 = vsyncadd [#allocation3], 4294967168 }
  0x35   :  { %668 = dma.done.wait [#allocation6], 2368  }
  0x36   :  { %669 = vsyncadd [#allocation6], 4294964928  ;;  %v677_v0 = vmov 0.0   ;;  %vm678_vm0 = vmmov 0   ;;  %v559_v1 = vld [vmem:[#allocation5] sm:$0xff]   ;;  %v560_v2 = vld [vmem:[#allocation5 + $0x8] sm:$0xff]  }
  0x37   :  { %481 = vmatprep.subr.bf16.mxu0 %v677_v0  ;;  %487 = vmatprep.mubr.msk.bf16.mxu0 %vm678_vm0, %v677_v0  ;;  %v561_v3 = vld [vmem:[#allocation5 + $0x10] ss:$0 sps:$4 sm:$0x33]   ;;  %v562_v4 = vld [vmem:[#allocation7] sm:$0xff]   ;;  %vm91_vm1 = vcmask 1041408   ;;  %v563_v5 = vld [vmem:[#allocation7 + $0x8] sm:$0xff]  }
  0x38   :  { %491 = vmatprep.subr.bf16.mxu1 %v677_v0  ;;  %507 = vmatprep.mubr.msk.bf16.mxu1 %vm678_vm0, %v677_v0  ;;  %v58_v6 = vld [vmem:[#allocation2] sm:$0xff]  ;;  %v93_v7 = vsel %vm91_vm1, %v561_v3, 0  ;;  %vm87_vm2 = vcmask 293888   ;;  %v564_v9 = vld [vmem:[#allocation7 + $0x10] sm:$0xff]   ;;  %v565_v10 = vld [vmem:[#allocation7 + $0x18] sm:$0xff]   ;;  %s679_s30 = smov [#allocation8]  }
  0x39   :  { %482 = vmatpush3.bf16.msra.mxu0 %v559_v1  ;;  %492 = vmatpush3.bf16.msra.mxu1 %v562_v4  ;;  %v59_v8 = vpack.c.bf16 %v58_v6, %v58_v6  ;;  %v566_v11 = vld [vmem:[#allocation7 + $0x20] sm:$0xff]   ;;  %v567_v12 = vld [vmem:[#allocation7 + $0x28] sm:$0xff]   ;;  %v568_v13 = vld [vmem:[#allocation7 + $0x30] sm:$0xff]   ;;  %s415_s5 = sshll.u32 %s679_s30, 4  ;;  %vm407_vm3 = vcmask 814080   ;;  %s416_s5 = int_to_ptr.vmem [resolvable:$true] %s415_s5 }
  0x3a   :  { %483 = vmatprep.subr.bf16.mxu0 %v677_v0  ;;  %493 = vmatprep.subr.bf16.mxu1 %v677_v0  ;;  %v569_v14 = vld [vmem:[#allocation7 + $0x38] sm:$0xff]   ;;  %v425_v15 = vld [vmem:[%s806_s3] ss:$0 sm:$0xff]  ;;  %v571_v24 = vld [vmem:[#allocation7 + $0x48] sm:$0xff]   ;;  %s644_s6 = scalar_lea.vmem %s416_s5, 64  ;;  %p649_p11 = scmp.lt.s32.totalorder %s416_s5, %s416_s5 }
  0x3b   :  { %v570_v23 = vld [vmem:[#allocation7 + $0x40] sm:$0xff]   ;;  %v572_v25 = vld [vmem:[#allocation7 + $0x50] sm:$0xff]   ;;  %v573_v26 = vld [vmem:[#allocation7 + $0x58] sm:$0xff]   ;;  %p645_p10 = scmp.ne.s32.totalorder %s416_s5, %s644_s6  ;;  %p650_p12 = scmp.lt.s32.totalorder %s644_s6, %s644_s6 }
  0x3c   :  { %v574_v27 = vld [vmem:[#allocation7 + $0x60] sm:$0xff]   ;;  %v575_v28 = vld [vmem:[#allocation7 + $0x68] sm:$0xff]   ;;  %v576_v37 = vld [vmem:[#allocation7 + $0x70] sm:$0xff]  }
  0x3d   :  { %484 = vmatpush3.bf16.msra.mxu0 %v560_v2  ;;  %494 = vmatpush3.bf16.msra.mxu1 %v563_v5  ;;  %v431_v29 = vld [vmem:[%s806_s3 + $0x1] ss:$0 sm:$0xff]  ;;  %v577_v38 = vld [vmem:[#allocation7 + $0x78] sm:$0xff]   ;;  %v441_v46 = vld [vmem:[%s806_s3 + $0x2] ss:$0 sm:$0xff]  ;;  %p651_p13 = por %p650_p12, %p649_p11 }
  0x3e   :  { %485 = vmatprep.subr.bf16.mxu0 %v677_v0  ;;  %495 = vmatprep.subr.bf16.mxu1 %v677_v0 }
  0x3f   :  { %p652_p0 = pnand %p651_p13, %p645_p10 }
  0x41   :  { %486 = vmatpush3.bf16.msra.mxu0 %v93_v7  ;;  %496 = vmatpush3.bf16.msra.mxu1 %v564_v9 }
  0x42   :  { %511 = vmatprep.subr.bf16.mxu0 %v677_v0  ;;  %497 = vmatprep.subr.bf16.mxu1 %v677_v0 }
  0x44   :  { %488 = vmatmul.mubr.msk.bf16.vlgmr.msra.gmra.mrb[0].mxu0 %vm87_vm2, %v59_v8 }
  0x45   :  { %512 = vmatpush3.bf16.msra.mxu0 %v562_v4  ;;  %527 = vmatprep.mubr.msk.bf16.mxu0 %vm678_vm0, %v677_v0 }
  0x46   :  { %513 = vmatprep.subr.bf16.mxu0 %v677_v0  ;;  %498 = vmatpush3.bf16.msra.mxu1 %v565_v10 }
  0x47   :  { %499 = vmatprep.subr.bf16.mxu1 %v677_v0 }
  0x49   :  { %514 = vmatpush3.bf16.msra.mxu0 %v563_v5 }
  0x4a   :  { %515 = vmatprep.subr.bf16.mxu0 %v677_v0  ;;  %500 = vmatpush3.bf16.msra.mxu1 %v566_v11 }
  0x4b   :  { %501 = vmatprep.subr.bf16.mxu1 %v677_v0 }
  0x4d   :  { %516 = vmatpush3.bf16.msra.mxu0 %v564_v9 }
  0x4e   :  { %517 = vmatprep.subr.bf16.mxu0 %v677_v0  ;;  %502 = vmatpush3.bf16.msra.mxu1 %v567_v12 }
  0x4f   :  { %503 = vmatprep.subr.bf16.mxu1 %v677_v0 }
  0x51   :  { %518 = vmatpush3.bf16.msra.mxu0 %v565_v10 }
  0x52   :  { %519 = vmatprep.subr.bf16.mxu0 %v677_v0  ;;  %504 = vmatpush3.bf16.msra.mxu1 %v568_v13 }
  0x53   :  { %505 = vmatprep.subr.bf16.mxu1 %v677_v0 }
  0x55   :  { %520 = vmatpush3.bf16.msra.mxu0 %v566_v11 }
  0x56   :  { %521 = vmatprep.subr.bf16.mxu0 %v677_v0  ;;  %506 = vmatpush3.bf16.msra.mxu1 %v569_v14 }
  0x57   :  { %531 = vmatprep.subr.bf16.mxu1 %v677_v0 }
  0x59   :  { %522 = vmatpush3.bf16.msra.mxu0 %v567_v12 }
  0x5a   :  { %523 = vmatprep.subr.bf16.mxu0 %v677_v0 }
  0x5d   :  { %524 = vmatpush3.bf16.msra.mxu0 %v568_v13 }
  0x5e   :  { %525 = vmatprep.subr.bf16.mxu0 %v677_v0 }
  0x61   :  { %526 = vmatpush3.bf16.msra.mxu0 %v569_v14 }
 0x117   :  { %v129_v16 = vpop.f32.mrb[0].mxu0 }
 0x118   :  { %v130_v17 = vadd.f32 %v425_v15, %v129_v16  ;;  %v489_v18 = vpop.f32.mrb[1].mxu0 }
 0x119   :  { %v132_v19 = vpop.f32.mrb[2].mxu0 }
 0x11a   :  { %v135_v20 = vmax.f32 %v130_v17, 0.0  ;;  %v490_v21 = vpop.f32.mrb[3].mxu0 }
 0x11c   :  { %v136_v22 = vpack.c.bf16 %v135_v20, %v135_v20 }
 0x11e   :  { %508 = vmatmul.mubr.bf16.vlgmr.msra.gmra.mrb[0].mxu1 %v136_v22 }
 0x11f   :  { %547 = vmatprep.mubr.msk.bf16.mxu1 %vm678_vm0, %v677_v0  ;;  %532 = vmatpush3.bf16.msra.mxu1 %v570_v23 }
 0x120   :  { %533 = vmatprep.subr.bf16.mxu1 %v677_v0 }
 0x123   :  { %534 = vmatpush3.bf16.msra.mxu1 %v571_v24 }
 0x124   :  { %535 = vmatprep.subr.bf16.mxu1 %v677_v0 }
 0x127   :  { %536 = vmatpush3.bf16.msra.mxu1 %v572_v25 }
 0x128   :  { %537 = vmatprep.subr.bf16.mxu1 %v677_v0 }
 0x12b   :  { %538 = vmatpush3.bf16.msra.mxu1 %v573_v26 }
 0x12c   :  { %539 = vmatprep.subr.bf16.mxu1 %v677_v0 }
 0x12f   :  { %540 = vmatpush3.bf16.msra.mxu1 %v574_v27 }
 0x130   :  { %541 = vmatprep.subr.bf16.mxu1 %v677_v0 }
 0x133   :  { %542 = vmatpush3.bf16.msra.mxu1 %v575_v28 }
 0x134   :  { %543 = vmatprep.subr.bf16.mxu1 %v677_v0 }
 0x137   :  { %544 = vmatpush3.bf16.msra.mxu1 %v576_v37 }
 0x138   :  { %545 = vmatprep.subr.bf16.mxu1 %v677_v0 }
 0x13b   :  { %546 = vmatpush3.bf16.msra.mxu1 %v577_v38 }
 0x1f1   :  { %v243_v30 = vpop.f32.mrb[0].mxu1 }
 0x1f2   :  { %v244_v31 = vadd.f32 %v431_v29, %v243_v30  ;;  %v509_v32 = vpop.f32.mrb[1].mxu1 }
 0x1f3   :  { %v246_v33 = vpop.f32.mrb[2].mxu1 }
 0x1f4   :  { %v249_v34 = vmax.f32 %v244_v31, 0.0  ;;  %v510_v35 = vpop.f32.mrb[3].mxu1 }
 0x1f6   :  { %v250_v36 = vpack.c.bf16 %v249_v34, %v249_v34 }
 0x1f8   :  { %528 = vmatmul.mubr.bf16.vlgmr.msra.gmra.mrb[4].mxu0 %v250_v36 }
 0x2cb   :  { %v285_v39 = vpop.f32.mrb[4].mxu0 }
 0x2cc   :  { %v286_v40 = vadd.f32 %v431_v29, %v285_v39  ;;  %v529_v41 = vpop.f32.mrb[5].mxu0 }
 0x2cd   :  { %v288_v42 = vpop.f32.mrb[6].mxu0 }
 0x2ce   :  { %v291_v43 = vmax.f32 %v286_v40, 0.0  ;;  %v530_v44 = vpop.f32.mrb[7].mxu0 }
 0x2d0   :  { %v292_v45 = vpack.c.bf16 %v291_v43, %v291_v43 }
 0x2d2   :  { %548 = vmatmul.mubr.bf16.vlgmr.msra.gmra.mrb[4].mxu1 %v292_v45 }
 0x3a5   :  { %v400_v47 = vpop.f32.mrb[4].mxu1 }
 0x3a6   :  { %v401_v48 = vadd.f32 %v441_v46, %v400_v47  ;;  %v549_v49 = vpop.f32.mrb[5].mxu1 }
 0x3a7   :  { %v403_v50 = vpop.f32.mrb[6].mxu1 }
 0x3a8   :  { %v406_v51 = vpack.c.bf16 %v401_v48, %v401_v48  ;;  %v550_v52 = vpop.f32.mrb[7].mxu1 }
 0x3aa   :  { %408 = vst.msk [vmem:[#allocation8] sm:$0xf] %vm407_vm3, %v406_v51 }
 0x3ab   :  { %655 = shalt.err (!%p652_p0)
}
 0x3ac   :  { %s656_s8 = scalar_lea.hbm %s807_s4, 64 }
 0x3ad   :  { %p657_p1 = scmp.ne.s32.totalorder %s807_s4, %s656_s8  ;;  %p660_p2 = scmp.lt.u32.totalorder %s656_s8, %s807_s4 }
 0x3af   :  { %p662_p3 = pnand %p660_p2, %p657_p1 }
 0x3b1   :  { %665 = shalt.err (!%p662_p3)
}
 0x3b2   :  { %418 = dma.vmem_to_hbm [thread:$0]  %s416_s5, 64, %s807_s4, [#allocation4]  }
 0x3b3   :  { %670 = dma.done.wait [#allocation4], 64  }
 0x3b4   :  { %671 = vsyncadd [#allocation4], 4294967232 }
 0x3b5   :  { %422 = vsyncpa [#allocation3], 1 }
 0x3b6   :  { %423 = vsyncpa [#allocation6], 1 }
 0x3b7   :  { %424 = vsyncpa [#allocation4], 1 }

</bundles_post_ra>
